<compile_context>
chip_gen: v6e
topology: v6e:2x2x1
jax: 0.10.0
libtpu: 0.0.40
codegen_flags: <defaults>
</compile_context>

<pallas_src>
import functools

import jax
import jax.numpy as jnp
from jax.experimental import pallas as pl
from jax.experimental.pallas import tpu as pltpu


LANE = 128
SUBLANE = 8


def _round_up(x, m):
    return ((x + m - 1) // m) * m


# ----------------------------------------------------------------------------
# Fused Pallas kernel: (Linear+ReLU) x n_enc -> Y,  (Linear+ReLU) x n_dec -> X_
# ----------------------------------------------------------------------------
def _make_fused_sdne_kernel(n_layers, n_enc, padded_out_dims):
    """padded_out_dims[i] = lane-padded (multiple-of-128) output width of layer i."""

    def kernel(*refs):
        # refs = [x, w1, ..., wL, bias_cat, y_out, xrec_out]
        x_ref = refs[0]
        w_refs = refs[1:1 + n_layers]
        b_ref = refs[1 + n_layers]                 # (1, sum(padded_out_dims)) f32
        y_ref = refs[2 + n_layers]
        xrec_ref = refs[3 + n_layers]

        h = x_ref[...]                             # (tm, K0p) f32, lane-dense
        off = 0
        for li in range(n_layers):
            w_ref = w_refs[li]                     # (Kp, Np), VMEM-resident
            np_ = padded_out_dims[li]
            b = b_ref[:, off:off + np_]            # static, 128-aligned slice
            acc = jnp.dot(h.astype(w_ref.dtype), w_ref[...],
                          preferred_element_type=jnp.float32)
            h = jnp.maximum(acc + b, 0.0)          # bias bcast + ReLU (f32)
            if li == n_enc - 1:
                # lane-dense (multiple-of-128) embedding store
                y_ref[...] = h.astype(y_ref.dtype)
            off += np_
        xrec_ref[...] = h.astype(xrec_ref.dtype)

    return kernel


def sdne_forward_fused(x, encoder, decoder, *, use_bf16=False):
    """Fused SDNE forward: returns (Y, X_) = (embedding, reconstruction)."""
    M, K0 = x.shape
    layers = list(encoder) + list(decoder)
    n_enc, n_dec = len(encoder), len(decoder)
    n_layers = n_enc + n_dec
    assert n_enc >= 1 and n_dec >= 1

    compute_dtype = jnp.bfloat16 if use_bf16 else jnp.float32

    # ---- lane-pad every feature dim to a multiple of 128 ------------------
    K0p = _round_up(K0, LANE)
    w_list, bias_segs = [], []
    out_dims, padded_out_dims = [], []
    prev_p = K0p
    for (w, b) in layers:
        K, N = w.shape
        Np = _round_up(N, LANE)
        wp = jnp.zeros((prev_p, Np), jnp.float32).at[:K, :N].set(w)
        w_list.append(wp.astype(compute_dtype))
        bias_segs.append(jnp.zeros((Np,), jnp.float32).at[:N].set(b))
        out_dims.append(N)
        padded_out_dims.append(Np)
        prev_p = Np
    bias_cat = jnp.concatenate(bias_segs).reshape(1, -1)      # (1, sum_Np) f32

    emb_dim, rec_dim = out_dims[n_enc - 1], out_dims[-1]
    emb_p, rec_p = padded_out_dims[n_enc - 1], padded_out_dims[-1]

    # ---- batch tiling ------------------------------------------------------
    Mp8 = _round_up(M, SUBLANE)
    if Mp8 <= 256:
        tm = Mp8                                   # single tile (best on 1-TC chips)
    elif Mp8 <= 1024:
        tm = _round_up((Mp8 + 1) // 2, SUBLANE)    # 2 tiles -> both v7x TCs, >=128 rows each
    else:
        tm = 512
    n_tiles = pl.cdiv(Mp8, tm)
    Mp = n_tiles * tm

    if Mp != M or K0p != K0:
        x = jnp.pad(x, ((0, Mp - M), (0, K0p - K0)))

    # ---- specs -------------------------------------------------------------
    in_specs = [pl.BlockSpec((tm, K0p), lambda i: (i, 0))]     # row tile of X
    for wp in w_list:
        # grid-invariant block index -> loaded once, VMEM-resident
        in_specs.append(pl.BlockSpec(wp.shape, lambda i: (0, 0)))
    in_specs.append(pl.BlockSpec((1, bias_cat.shape[1]), lambda i: (0, 0)))

    out_shape = (
        jax.ShapeDtypeStruct((Mp, emb_p), x.dtype),
        jax.ShapeDtypeStruct((Mp, rec_p), x.dtype),
    )
    out_specs = [
        pl.BlockSpec((tm, emb_p), lambda i: (i, 0)),
        pl.BlockSpec((tm, rec_p), lambda i: (i, 0)),
    ]

    # ---- VMEM budget + advisory cost --------------------------------------
    itemsize_w = 2 if use_bf16 else 4
    w_bytes = sum(int(wp.shape[0]) * int(wp.shape[1]) for wp in w_list) * itemsize_w
    b_bytes = int(bias_cat.shape[1]) * 4
    io_bytes = tm * (K0p + emb_p + rec_p) * 4
    act_bytes = tm * max([K0p] + padded_out_dims) * 4 * 4      # working-set headroom
    vmem_limit = min(max(2 * (w_bytes + b_bytes + io_bytes) + act_bytes + (4 << 20),
                         8 << 20), 64 << 20)

    flops = 2 * Mp * sum(int(wp.shape[0]) * int(wp.shape[1]) for wp in w_list)
    bytes_accessed = (Mp * K0p * 4 + w_bytes + b_bytes + Mp * (emb_p + rec_p) * 4)

    y, xrec = pl.pallas_call(
        _make_fused_sdne_kernel(n_layers, n_enc, tuple(padded_out_dims)),
        out_shape=out_shape,
        grid_spec=pltpu.PrefetchScalarGridSpec(
            num_scalar_prefetch=0,
            grid=(n_tiles,),
            in_specs=in_specs,
            out_specs=out_specs,
        ),
        compiler_params=pltpu.CompilerParams(
            dimension_semantics=("parallel",),     # batch tiles -> both v7x TCs
            vmem_limit_bytes=int(vmem_limit),
        ),
        cost_estimate=pl.CostEstimate(
            flops=flops, transcendentals=0, bytes_accessed=bytes_accessed),
    )(x, *w_list, bias_cat)

    # Only slice when padding was actually introduced (avoids extra HBM copies
    # in the common, already-aligned case).
    if Mp != M or emb_p != emb_dim:
        y = y[:M, :emb_dim]
    if Mp != M or rec_p != rec_dim:
        xrec = xrec[:M, :rec_dim]
    return y, xrec


# ----------------------------------------------------------------------------
# SDNE model (parameters initialized deterministically in-script)
# ----------------------------------------------------------------------------
class SDNEPallas:
    # TODO(synk): graph adjacency / Laplacian construction (_init_matrix,
    # _vertex_index_mapping, get_matrix) is host-side preprocessing with no
    # kernel equivalent; only the forward pass is implemented here.
    def __init__(self, node_number, hidden_layers, key):
        self.node_number = node_number
        self.hidden_layers = list(hidden_layers)

        enc_dims = []
        prev = node_number
        for h in self.hidden_layers:
            enc_dims.append((prev, h))
            prev = h

        dec_dims = []
        for i in reversed(range(len(self.hidden_layers))):
            out_dim = node_number if i == 0 else self.hidden_layers[i - 1]
            dec_dims.append((self.hidden_layers[i], out_dim))

        def init_layer(k, fan_in, fan_out):
            kw, kb = jax.random.split(k)
            bound = 1.0 / jnp.sqrt(jnp.float32(fan_in))
            # weight stored as (in, out) == PyTorch weight.T
            w = jax.random.uniform(kw, (fan_in, fan_out), jnp.float32,
                                   minval=-bound, maxval=bound)
            b = jax.random.uniform(kb, (fan_out,), jnp.float32,
                                   minval=-bound, maxval=bound)
            return w, b

        keys = jax.random.split(key, len(enc_dims) + len(dec_dims))
        self.encoder = [init_layer(keys[i], fi, fo)
                        for i, (fi, fo) in enumerate(enc_dims)]
        self.decoder = [init_layer(keys[len(enc_dims) + i], fi, fo)
                        for i, (fi, fo) in enumerate(dec_dims)]

    @functools.partial(jax.jit, static_argnums=(0,), static_argnames=("use_bf16",))
    def forward(self, X, use_bf16=False):
        return sdne_forward_fused(X, self.encoder, self.decoder,
                                  use_bf16=use_bf16)


# ----------------------------------------------------------------------------
# Reference (plain JAX) forward for a sanity check
# ----------------------------------------------------------------------------
def reference_forward(model, X):
    for w, b in model.encoder:
        X = jnp.maximum(X @ w + b, 0.0)
    Y = X
    for w, b in model.decoder:
        X = jnp.maximum(X @ w + b, 0.0)
    return Y, X


if __name__ == "__main__":
    key = jax.random.PRNGKey(0)
    k_model, k_x, k_x2 = jax.random.split(key, 3)

    node_number = 256               # graph.number_of_nodes()
    hidden_layers = [128, 64]       # cfg.SDNE.LAYERS
    batch = 128                     # rows of the adjacency matrix fed in

    model = SDNEPallas(node_number, hidden_layers, k_model)

    # Synthetic input: rows of a (dense, nonnegative) adjacency-like matrix.
    X = jax.random.uniform(k_x, (batch, node_number), jnp.float32)

    Y, X_rec = model.forward(X)
    Y = jax.block_until_ready(Y)
    X_rec = jax.block_until_ready(X_rec)

    # Sanity check against pure-JAX reference (exact f32 path).
    Y_ref, X_ref = reference_forward(model, X)
    assert Y.shape == (batch, hidden_layers[-1])
    assert X_rec.shape == (batch, node_number)
    assert jnp.allclose(Y, Y_ref, atol=1e-4, rtol=1e-4)
    assert jnp.allclose(X_rec, X_ref, atol=1e-4, rtol=1e-4)

    # Padded-tail path (batch not a multiple of the sublane tile).
    X_odd = jax.random.uniform(k_x2, (37, node_number), jnp.float32)
    Y2, X2_rec = model.forward(X_odd)
    Y2 = jax.block_until_ready(Y2)
    X2_rec = jax.block_until_ready(X2_rec)
    Y2_ref, X2_ref = reference_forward(model, X_odd)
    assert Y2.shape == (37, hidden_layers[-1])
    assert X2_rec.shape == (37, node_number)
    assert jnp.allclose(Y2, Y2_ref, atol=1e-4, rtol=1e-4)
    assert jnp.allclose(X2_rec, X2_ref, atol=1e-4, rtol=1e-4)

    # Optional bf16-weight / bf16-matmul-input fast path (f32 accumulation);
    # numerics-changing, so compared with a loose tolerance.
    Y3, X3_rec = model.forward(X, use_bf16=True)
    Y3 = jax.block_until_ready(Y3)
    X3_rec = jax.block_until_ready(X3_rec)
    assert Y3.shape == (batch, hidden_layers[-1])
    assert X3_rec.shape == (batch, node_number)
    assert jnp.allclose(Y3, Y_ref, atol=5e-2, rtol=5e-2)
    assert jnp.allclose(X3_rec, X_ref, atol=5e-2, rtol=5e-2)

    print("KERNEL_OK")
</pallas_src>

<mosaic_0001>
module attributes {stable_mosaic.version = 11 : i64} {
  func.func @kernel(%arg0: i32, %arg1: memref<128x256xf32, #tpu.memory_space<vmem>>, %arg2: memref<256x128xf32, #tpu.memory_space<vmem>>, %arg3: memref<128x128xf32, #tpu.memory_space<vmem>>, %arg4: memref<128x128xf32, #tpu.memory_space<vmem>>, %arg5: memref<128x256xf32, #tpu.memory_space<vmem>>, %arg6: memref<1x640xf32, #tpu.memory_space<vmem>>, %arg7: memref<128x128xf32, #tpu.memory_space<vmem>>, %arg8: memref<128x256xf32, #tpu.memory_space<vmem>>) attributes {dimension_semantics = [#tpu.dimension_semantics<parallel>], iteration_bounds = array<i64: 1>, scalar_prefetch = 0 : i64, scratch_operands = 0 : i64, tpu.core_type = #tpu.core_type<tc>, window_params = [{transform_indices = @transform_0, window_bounds = array<i64: 128, 256>}, {pipeline_mode = #tpu.pipeline_mode<synchronous>, transform_indices = @transform_1, window_bounds = array<i64: 256, 128>}, {pipeline_mode = #tpu.pipeline_mode<synchronous>, transform_indices = @transform_2, window_bounds = array<i64: 128, 128>}, {pipeline_mode = #tpu.pipeline_mode<synchronous>, transform_indices = @transform_3, window_bounds = array<i64: 128, 128>}, {pipeline_mode = #tpu.pipeline_mode<synchronous>, transform_indices = @transform_4, window_bounds = array<i64: 128, 256>}, {pipeline_mode = #tpu.pipeline_mode<synchronous>, transform_indices = @transform_5, window_bounds = array<i64: 1, 640>}, {transform_indices = @transform_6, window_bounds = array<i64: 128, 128>}, {transform_indices = @transform_7, window_bounds = array<i64: 128, 256>}]} {
    %c0 = arith.constant 0 : index
    %c0_0 = arith.constant 0 : index
    %0 = vector.load %arg1[%c0, %c0_0] : memref<128x256xf32, #tpu.memory_space<vmem>>, vector<128x256xf32>
    %c0_1 = arith.constant 0 : index
    %c0_2 = arith.constant 0 : index
    %1 = vector.load %arg6[%c0_1, %c0_2] : memref<1x640xf32, #tpu.memory_space<vmem>>, vector<1x128xf32>
    %c0_3 = arith.constant 0 : index
    %c0_4 = arith.constant 0 : index
    %2 = vector.load %arg2[%c0_3, %c0_4] : memref<256x128xf32, #tpu.memory_space<vmem>>, vector<256x128xf32>
    %cst = arith.constant dense<0.000000e+00> : vector<128x128xf32>
    %3 = tpu.matmul %0, %2, %cst {dimension_numbers = #tpu.dot_dimension_numbers<[1], [0], [0], [1], [0, 0, 1, 1], [], []>} : vector<128x256xf32>, vector<256x128xf32>, vector<128x128xf32> -> vector<128x128xf32>
    %4 = vector.broadcast %1 : vector<1x128xf32> to vector<128x128xf32>
    %5 = arith.addf %3, %4 : vector<128x128xf32>
    %cst_5 = arith.constant 0.000000e+00 : f32
    %6 = vector.broadcast %cst_5 : f32 to vector<128x128xf32>
    %7 = arith.maximumf %5, %6 : vector<128x128xf32>
    %c0_6 = arith.constant 0 : index
    %c128 = arith.constant 128 : index
    %8 = vector.load %arg6[%c0_6, %c128] : memref<1x640xf32, #tpu.memory_space<vmem>>, vector<1x128xf32>
    %c0_7 = arith.constant 0 : index
    %c0_8 = arith.constant 0 : index
    %9 = vector.load %arg3[%c0_7, %c0_8] : memref<128x128xf32, #tpu.memory_space<vmem>>, vector<128x128xf32>
    %cst_9 = arith.constant dense<0.000000e+00> : vector<128x128xf32>
    %10 = tpu.matmul %7, %9, %cst_9 {dimension_numbers = #tpu.dot_dimension_numbers<[1], [0], [0], [1], [0, 0, 1, 1], [], []>} : vector<128x128xf32>, vector<128x128xf32>, vector<128x128xf32> -> vector<128x128xf32>
    %11 = vector.broadcast %8 : vector<1x128xf32> to vector<128x128xf32>
    %12 = arith.addf %10, %11 : vector<128x128xf32>
    %cst_10 = arith.constant 0.000000e+00 : f32
    %13 = vector.broadcast %cst_10 : f32 to vector<128x128xf32>
    %14 = arith.maximumf %12, %13 : vector<128x128xf32>
    %c0_11 = arith.constant 0 : index
    %c0_12 = arith.constant 0 : index
    %15 = vector.load %arg7[%c0_11, %c0_12] : memref<128x128xf32, #tpu.memory_space<vmem>>, vector<128x128xf32>
    tpu.vector_store %arg7[%c0_11, %c0_12], %14 {strides = array<i32>} : memref<128x128xf32, #tpu.memory_space<vmem>>, vector<128x128xf32>,
    %c0_13 = arith.constant 0 : index
    %c256 = arith.constant 256 : index
    %16 = vector.load %arg6[%c0_13, %c256] : memref<1x640xf32, #tpu.memory_space<vmem>>, vector<1x128xf32>
    %c0_14 = arith.constant 0 : index
    %c0_15 = arith.constant 0 : index
    %17 = vector.load %arg4[%c0_14, %c0_15] : memref<128x128xf32, #tpu.memory_space<vmem>>, vector<128x128xf32>
    %cst_16 = arith.constant dense<0.000000e+00> : vector<128x128xf32>
    %18 = tpu.matmul %14, %17, %cst_16 {dimension_numbers = #tpu.dot_dimension_numbers<[1], [0], [0], [1], [0, 0, 1, 1], [], []>} : vector<128x128xf32>, vector<128x128xf32>, vector<128x128xf32> -> vector<128x128xf32>
    %19 = vector.broadcast %16 : vector<1x128xf32> to vector<128x128xf32>
    %20 = arith.addf %18, %19 : vector<128x128xf32>
    %cst_17 = arith.constant 0.000000e+00 : f32
    %21 = vector.broadcast %cst_17 : f32 to vector<128x128xf32>
    %22 = arith.maximumf %20, %21 : vector<128x128xf32>
    %c0_18 = arith.constant 0 : index
    %c384 = arith.constant 384 : index
    %23 = vector.load %arg6[%c0_18, %c384] : memref<1x640xf32, #tpu.memory_space<vmem>>, vector<1x256xf32>
    %c0_19 = arith.constant 0 : index
    %c0_20 = arith.constant 0 : index
    %24 = vector.load %arg5[%c0_19, %c0_20] : memref<128x256xf32, #tpu.memory_space<vmem>>, vector<128x256xf32>
    %cst_21 = arith.constant dense<0.000000e+00> : vector<128x256xf32>
    %25 = tpu.matmul %22, %24, %cst_21 {dimension_numbers = #tpu.dot_dimension_numbers<[1], [0], [0], [1], [0, 0, 1, 1], [], []>} : vector<128x128xf32>, vector<128x256xf32>, vector<128x256xf32> -> vector<128x256xf32>
    %26 = vector.broadcast %23 : vector<1x256xf32> to vector<128x256xf32>
    %27 = arith.addf %25, %26 : vector<128x256xf32>
    %cst_22 = arith.constant 0.000000e+00 : f32
    %28 = vector.broadcast %cst_22 : f32 to vector<128x256xf32>
    %29 = arith.maximumf %27, %28 : vector<128x256xf32>
    %c0_23 = arith.constant 0 : index
    %c0_24 = arith.constant 0 : index
    %30 = vector.load %arg8[%c0_23, %c0_24] : memref<128x256xf32, #tpu.memory_space<vmem>>, vector<128x256xf32>
    tpu.vector_store %arg8[%c0_23, %c0_24], %29 {strides = array<i32>} : memref<128x256xf32, #tpu.memory_space<vmem>>, vector<128x256xf32>,
    return
  }
  func.func @transform_0(%arg0: i32) -> (i32, i32) {
    %c0_i32 = arith.constant 0 : i32
    %c0_i32_0 = arith.constant 0 : i32
    return %arg0, %c0_i32 : i32, i32
  }
  func.func @transform_1(%arg0: i32) -> (i32, i32) {
    %c0_i32 = arith.constant 0 : i32
    %c0_i32_0 = arith.constant 0 : i32
    %c0_i32_1 = arith.constant 0 : i32
    return %c0_i32, %c0_i32_0 : i32, i32
  }
  func.func @transform_2(%arg0: i32) -> (i32, i32) {
    %c0_i32 = arith.constant 0 : i32
    %c0_i32_0 = arith.constant 0 : i32
    %c0_i32_1 = arith.constant 0 : i32
    return %c0_i32, %c0_i32_0 : i32, i32
  }
  func.func @transform_3(%arg0: i32) -> (i32, i32) {
    %c0_i32 = arith.constant 0 : i32
    %c0_i32_0 = arith.constant 0 : i32
    %c0_i32_1 = arith.constant 0 : i32
    return %c0_i32, %c0_i32_0 : i32, i32
  }
  func.func @transform_4(%arg0: i32) -> (i32, i32) {
    %c0_i32 = arith.constant 0 : i32
    %c0_i32_0 = arith.constant 0 : i32
    %c0_i32_1 = arith.constant 0 : i32
    return %c0_i32, %c0_i32_0 : i32, i32
  }
  func.func @transform_5(%arg0: i32) -> (i32, i32) {
    %c0_i32 = arith.constant 0 : i32
    %c0_i32_0 = arith.constant 0 : i32
    %c0_i32_1 = arith.constant 0 : i32
    return %c0_i32, %c0_i32_0 : i32, i32
  }
  func.func @transform_6(%arg0: i32) -> (i32, i32) {
    %c0_i32 = arith.constant 0 : i32
    %c0_i32_0 = arith.constant 0 : i32
    return %arg0, %c0_i32 : i32, i32
  }
  func.func @transform_7(%arg0: i32) -> (i32, i32) {
    %c0_i32 = arith.constant 0 : i32
    %c0_i32_0 = arith.constant 0 : i32
    return %arg0, %c0_i32 : i32, i32
  }
}

</mosaic_0001>

<bundles_post_ra>
// kernel: forward.1
= control target key start
LH: loop header
LB: loop body
LE: loop exit
PB: predicated region body
PF: predicated region fallthrough
CT: control target
= control target key end

     0   :  { %13 = vsyncpa [#allocation3], 0  ;;  %s1810_s0 = inlined_call_operand.vmem [shape: f32[128,256], index: 0, kind: input, shape index: {}]   ;;  %s1811_s1 = inlined_call_operand.hbm [shape: f32[256,128], index: 1, kind: input, shape index: {}]   ;;  %s1812_s2 = inlined_call_operand.vmem [shape: f32[128,128], index: 2, kind: input, shape index: {}]   ;;  %s1813_s3 = inlined_call_operand.hbm [shape: f32[128,128], index: 3, kind: input, shape index: {}]   ;;  %s1814_s4 = inlined_call_operand.vmem [shape: f32[128,256], index: 4, kind: input, shape index: {}]   ;;  %s1815_s5 = inlined_call_operand.vmem [shape: f32[1,640], index: 5, kind: input, shape index: {}]   ;;  %s1816_s6 = inlined_call_operand.vmem [shape: f32[128,128], index: 6, kind: output, shape index: {0}]   ;;  %s1817_s7 = inlined_call_operand.hbm [shape: f32[128,256], index: 7, kind: output, shape index: {1}]  }
   0x1   :  { %14 = vsyncpa [#allocation6], 0 }
   0x2   :  { %15 = vsyncpa [#allocation4], 0  ;;  %s1326_s24 = smov [#allocation2]  }
   0x3   :  { %s23_s25 = sshll.u32 %s1326_s24, 4  ;;  %s24_s25 = int_to_ptr.vmem [resolvable:$true] %s23_s25 }
   0x4   :  { %s1268_s26 = scalar_lea.vmem %s24_s25, 4096  ;;  %p1273_p1 = scmp.lt.s32.totalorder %s24_s25, %s24_s25 }
   0x5   :  { %p1269_p0 = scmp.ne.s32.totalorder %s24_s25, %s1268_s26  ;;  %p1274_p2 = scmp.lt.s32.totalorder %s1268_s26, %s1268_s26 }
   0x7   :  { %p1275_p3 = por %p1274_p2, %p1273_p1 }
   0x9   :  { %p1276_p4 = pnand %p1275_p3, %p1269_p0 }
   0xb   :  { %1279 = shalt.err (!%p1276_p4)
}
   0xc   :  { %s1327_s27 = smov 128   ;;  %s1328_s28 = smov 8  }
   0xd   :  { %29 = dma.hbm_to_vmem [thread:$0]  %s1811_s1, 4096, %s24_s25, [#allocation3], %s1327_s27, %s1327_s27, %s1328_s28  }
   0xe   :  { %s1329_s8 = smov [#allocation5]  }
   0xf   :  { %s37_s9 = sshll.u32 %s1329_s8, 4  ;;  %s38_s9 = int_to_ptr.vmem [resolvable:$true] %s37_s9 }
  0x10   :  { %s1288_s10 = scalar_lea.vmem %s38_s9, 2048  ;;  %p1293_p6 = scmp.lt.s32.totalorder %s38_s9, %s38_s9 }
  0x11   :  { %p1289_p5 = scmp.ne.s32.totalorder %s38_s9, %s1288_s10  ;;  %p1294_p7 = scmp.lt.s32.totalorder %s1288_s10, %s1288_s10 }
  0x13   :  { %p1295_p8 = por %p1294_p7, %p1293_p6 }
  0x15   :  { %p1296_p9 = pnand %p1295_p8, %p1289_p5 }
  0x17   :  { %1299 = shalt.err (!%p1296_p9)
}
  0x18   :  { %43 = dma.hbm_to_vmem [thread:$0]  %s1813_s3, 2048, %s38_s9, [#allocation6], %s1327_s27, %s1327_s27, %s1328_s28  }
  0x19   :  { %1320 = dma.done.wait [#allocation3], 4096  }
  0x1a   :  { %1321 = vsyncadd [#allocation3], 4294963200 }
  0x1b   :  { %1322 = dma.done.wait [#allocation6], 2048  }
  0x1c   :  { %1323 = vsyncadd [#allocation6], 4294965248  ;;  %v118_v0 = vld [vmem:[#allocation2 + $0xf8] sm:$0xff]  ;;  %v117_v2 = vld [vmem:[#allocation2 + $0xf0] sm:$0xff] }
  0x1d   :  { %v102_v1 = vld [vmem:[#allocation2 + $0x78] sm:$0xff]  ;;  %964 = vmatprep.subr.mxu0 %v118_v0  ;;  %v101_v3 = vld [vmem:[#allocation2 + $0x70] sm:$0xff]  ;;  %1220 = vmatprep.subr.mxu1 %v118_v0  ;;  %v116_v4 = vld [vmem:[#allocation2 + $0xe8] sm:$0xff] }
  0x1e   :  { %965 = vmatpush3.msra.mxu0 %v102_v1  ;;  %1236 = vmatpush3.msra.mxu1 %v102_v1  ;;  %v100_v5 = vld [vmem:[#allocation2 + $0x68] sm:$0xff]  ;;  %v115_v6 = vld [vmem:[#allocation2 + $0xe0] sm:$0xff]  ;;  %v114_v8 = vld [vmem:[#allocation2 + $0xd8] sm:$0xff] }
  0x1f   :  { %966 = vmatprep.subr.mxu0 %v117_v2  ;;  %1221 = vmatprep.subr.mxu1 %v117_v2  ;;  %v99_v7 = vld [vmem:[#allocation2 + $0x60] sm:$0xff]  ;;  %v98_v9 = vld [vmem:[#allocation2 + $0x58] sm:$0xff]  ;;  %v113_v10 = vld [vmem:[#allocation2 + $0xd0] sm:$0xff] }
  0x20   :  { %967 = vmatpush3.msra.mxu0 %v101_v3  ;;  %1237 = vmatpush3.msra.mxu1 %v101_v3  ;;  %v97_v11 = vld [vmem:[#allocation2 + $0x50] sm:$0xff]  ;;  %v112_v12 = vld [vmem:[#allocation2 + $0xc8] sm:$0xff]  ;;  %v111_v15 = vld [vmem:[#allocation2 + $0xc0] sm:$0xff] }
  0x21   :  { %968 = vmatprep.subr.mxu0 %v116_v4  ;;  %1222 = vmatprep.subr.mxu1 %v116_v4  ;;  %v55_v13 = vld [vmem:[%s1810_s0 + $0x8] sm:$0xff]  ;;  %v95_v16 = vld [vmem:[#allocation2 + $0x40] sm:$0xff]  ;;  %v110_v17 = vld [vmem:[#allocation2 + $0xb8] sm:$0xff] }
  0x22   :  { %969 = vmatpush3.msra.mxu0 %v100_v5  ;;  %1238 = vmatpush3.msra.mxu1 %v100_v5  ;;  %v96_v14 = vld [vmem:[#allocation2 + $0x48] sm:$0xff]  ;;  %v94_v18 = vld [vmem:[#allocation2 + $0x38] sm:$0xff]  ;;  %v109_v19 = vld [vmem:[#allocation2 + $0xb0] sm:$0xff] }
  0x23   :  { %970 = vmatprep.subr.mxu0 %v115_v6  ;;  %1223 = vmatprep.subr.mxu1 %v115_v6  ;;  %v93_v20 = vld [vmem:[#allocation2 + $0x30] sm:$0xff]  ;;  %v108_v21 = vld [vmem:[#allocation2 + $0xa8] sm:$0xff]  ;;  %v107_v23 = vld [vmem:[#allocation2 + $0xa0] sm:$0xff] }
  0x24   :  { %971 = vmatpush3.msra.mxu0 %v99_v7  ;;  %1239 = vmatpush3.msra.mxu1 %v99_v7  ;;  %v92_v22 = vld [vmem:[#allocation2 + $0x28] sm:$0xff]  ;;  %v91_v24 = vld [vmem:[#allocation2 + $0x20] sm:$0xff]  ;;  %v106_v25 = vld [vmem:[#allocation2 + $0x98] sm:$0xff] }
  0x25   :  { %972 = vmatprep.subr.mxu0 %v114_v8  ;;  %1224 = vmatprep.subr.mxu1 %v114_v8  ;;  %v90_v26 = vld [vmem:[#allocation2 + $0x18] sm:$0xff]  ;;  %v105_v27 = vld [vmem:[#allocation2 + $0x90] sm:$0xff]  ;;  %v104_v29 = vld [vmem:[#allocation2 + $0x88] sm:$0xff] }
  0x26   :  { %973 = vmatpush3.msra.mxu0 %v98_v9  ;;  %1240 = vmatpush3.msra.mxu1 %v98_v9  ;;  %v89_v28 = vld [vmem:[#allocation2 + $0x10] sm:$0xff]  ;;  %v88_v30 = vld [vmem:[#allocation2 + $0x8] sm:$0xff]  ;;  %v103_v31 = vld [vmem:[#allocation2 + $0x80] sm:$0xff] }
  0x27   :  { %974 = vmatprep.subr.mxu0 %v113_v10  ;;  %189 = vmatprep.mubr.f32.mxu0 %v55_v13  ;;  %v87_v32 = vld [vmem:[#allocation2] sm:$0xff]  ;;  %v57_v34 = vld [vmem:[%s1810_s0 + $0x18] sm:$0xff]  ;;  %v71_v35 = vld [vmem:[%s1810_s0 + $0x88] sm:$0xff] }
  0x28   :  { %975 = vmatpush3.msra.mxu0 %v97_v11  ;;  %1225 = vmatprep.subr.mxu1 %v113_v10  ;;  %v54_v33 = vld [vmem:[%s1810_s0] sm:$0xff]  ;;  %v302_v37 = vld [vmem:[%s1812_s2 + $0x78] sm:$0xff]  ;;  %v56_v39 = vld [vmem:[%s1810_s0 + $0x10] sm:$0xff] }
  0x29   :  { %976 = vmatprep.subr.mxu0 %v112_v12  ;;  %1241 = vmatpush3.msra.mxu1 %v97_v11  ;;  %v70_v36 = vld [vmem:[%s1810_s0 + $0x80] sm:$0xff]  ;;  %v73_v38 = vld [vmem:[%s1810_s0 + $0x98] sm:$0xff]  ;;  %v301_v40 = vld [vmem:[%s1812_s2 + $0x70] sm:$0xff] }
  0x2a   :  { %977 = vmatpush3.msra.mxu0 %v96_v14  ;;  %1226 = vmatprep.subr.mxu1 %v112_v12  ;;  %v59_v41 = vld [vmem:[%s1810_s0 + $0x28] sm:$0xff]  ;;  %v72_v42 = vld [vmem:[%s1810_s0 + $0x90] sm:$0xff]  ;;  %v58_v45 = vld [vmem:[%s1810_s0 + $0x20] sm:$0xff] }
  0x2b   :  { %978 = vmatprep.subr.mxu0 %v111_v15  ;;  %1242 = vmatpush3.msra.mxu1 %v96_v14  ;;  %v300_v43 = vld [vmem:[%s1812_s2 + $0x68] sm:$0xff]  ;;  %v299_v46 = vld [vmem:[%s1812_s2 + $0x60] sm:$0xff]  ;;  %v61_v47 = vld [vmem:[%s1810_s0 + $0x38] sm:$0xff] }
  0x2c   :  { %979 = vmatpush3.msra.mxu0 %v95_v16  ;;  %1227 = vmatprep.subr.mxu1 %v111_v15  ;;  %v75_v44 = vld [vmem:[%s1810_s0 + $0xa8] sm:$0xff]  ;;  %v74_v48 = vld [vmem:[%s1810_s0 + $0xa0] sm:$0xff]  ;;  %v298_v49 = vld [vmem:[%s1812_s2 + $0x58] sm:$0xff] }
  0x2d   :  { %980 = vmatprep.subr.mxu0 %v110_v17  ;;  %1243 = vmatpush3.msra.mxu1 %v95_v16  ;;  %v77_v50 = vld [vmem:[%s1810_s0 + $0xb8] sm:$0xff]  ;;  %v60_v51 = vld [vmem:[%s1810_s0 + $0x30] sm:$0xff]  ;;  %v63_v53 = vld [vmem:[%s1810_s0 + $0x48] sm:$0xff] }
  0x2e   :  { %981 = vmatpush3.msra.mxu0 %v94_v18  ;;  %1228 = vmatprep.subr.mxu1 %v110_v17  ;;  %v297_v52 = vld [vmem:[%s1812_s2 + $0x50] sm:$0xff]  ;;  %v296_v55 = vld [vmem:[%s1812_s2 + $0x48] sm:$0xff]  ;;  %v62_v57 = vld [vmem:[%s1810_s0 + $0x40] sm:$0xff] }
  0x2f   :  { %982 = vmatprep.subr.mxu0 %v109_v19  ;;  %1244 = vmatpush3.msra.mxu1 %v94_v18  ;;  %v76_v54 = vld [vmem:[%s1810_s0 + $0xb0] sm:$0xff]  ;;  %v79_v56 = vld [vmem:[%s1810_s0 + $0xc8] sm:$0xff]  ;;  %v295_v58 = vld [vmem:[%s1812_s2 + $0x40] sm:$0xff] }
  0x30   :  { %983 = vmatpush3.msra.mxu0 %v93_v20  ;;  %1229 = vmatprep.subr.mxu1 %v109_v19  ;;  %v65_v59 = vld [vmem:[%s1810_s0 + $0x58] sm:$0xff]  ;;  %v78_v60 = vld [vmem:[%s1810_s0 + $0xc0] sm:$0xff]  ;;  %v64_v63 = vld [vmem:[%s1810_s0 + $0x50] sm:$0xff] }
  0x31   :  { %984 = vmatprep.subr.mxu0 %v108_v21  ;;  %1245 = vmatpush3.msra.mxu1 %v93_v20  ;;  %v294_v61 = vld [vmem:[%s1812_s2 + $0x38] sm:$0xff]  ;;  %v293_v0 = vld [vmem:[%s1812_s2 + $0x30] sm:$0xff]  ;;  %v67_v1 = vld [vmem:[%s1810_s0 + $0x68] sm:$0xff] }
  0x32   :  { %985 = vmatpush3.msra.mxu0 %v92_v22  ;;  %1230 = vmatprep.subr.mxu1 %v108_v21  ;;  %v81_v62 = vld [vmem:[%s1810_s0 + $0xd8] sm:$0xff]  ;;  %v80_v2 = vld [vmem:[%s1810_s0 + $0xd0] sm:$0xff]  ;;  %v83_v3 = vld [vmem:[%s1810_s0 + $0xe8] sm:$0xff] }
  0x33   :  { %986 = vmatprep.subr.mxu0 %v107_v23  ;;  %1246 = vmatpush3.msra.mxu1 %v92_v22  ;;  %v66_v4 = vld [vmem:[%s1810_s0 + $0x60] sm:$0xff]  ;;  %v69_v5 = vld [vmem:[%s1810_s0 + $0x78] sm:$0xff]  ;;  %v68_v8 = vld [vmem:[%s1810_s0 + $0x70] sm:$0xff] }
  0x34   :  { %987 = vmatpush3.msra.mxu0 %v91_v24  ;;  %1231 = vmatprep.subr.mxu1 %v107_v23  ;;  %v82_v6 = vld [vmem:[%s1810_s0 + $0xe0] sm:$0xff]  ;;  %v85_v7 = vld [vmem:[%s1810_s0 + $0xf8] sm:$0xff]  ;;  %v84_v9 = vld [vmem:[%s1810_s0 + $0xf0] sm:$0xff] }
  0x35   :  { %988 = vmatprep.subr.mxu0 %v106_v25  ;;  %1247 = vmatpush3.msra.mxu1 %v91_v24  ;;  %v292_v10 = vld [vmem:[%s1812_s2 + $0x28] sm:$0xff]  ;;  %v291_v11 = vld [vmem:[%s1812_s2 + $0x20] sm:$0xff]  ;;  %v290_v12 = vld [vmem:[%s1812_s2 + $0x18] sm:$0xff] }
  0x36   :  { %989 = vmatpush3.msra.mxu0 %v90_v26  ;;  %1232 = vmatprep.subr.mxu1 %v106_v25  ;;  %v289_v13 = vld [vmem:[%s1812_s2 + $0x10] sm:$0xff]  ;;  %v288_v14 = vld [vmem:[%s1812_s2 + $0x8] sm:$0xff]  ;;  %v287_v15 = vld [vmem:[%s1812_s2] sm:$0xff] }
  0x37   :  { %990 = vmatprep.subr.mxu0 %v105_v27  ;;  %1248 = vmatpush3.msra.mxu1 %v90_v26  ;;  %v502_v16 = vld [vmem:[#allocation5 + $0x78] sm:$0xff]  ;;  %v1527_v18 = vld [vmem:[%s1815_s5] ss:$0 sm:$0xff] }
  0x38   :  { %991 = vmatpush3.msra.mxu0 %v89_v28  ;;  %1233 = vmatprep.subr.mxu1 %v105_v27 }
  0x39   :  { %992 = vmatprep.subr.mxu0 %v104_v29  ;;  %1249 = vmatpush3.msra.mxu1 %v89_v28 }
  0x3a   :  { %993 = vmatpush3.msra.mxu0 %v88_v30  ;;  %1234 = vmatprep.subr.mxu1 %v104_v29 }
  0x3b   :  { %994 = vmatprep.subr.mxu0 %v103_v31  ;;  %1250 = vmatpush3.msra.mxu1 %v88_v30 }
  0x3c   :  { %995 = vmatpush3.msra.mxu0 %v87_v32  ;;  %1235 = vmatprep.subr.mxu1 %v103_v31 }
  0x3d   :  { %190 = vmatmul.mubr.f32.vlgmr.msra.gmra.mxu0 %v54_v33  ;;  %1251 = vmatpush3.msra.mxu1 %v87_v32 }
  0x3e   :  { %194 = vmatprep.mubr.f32.mxu0 %v57_v34  ;;  %229 = vmatprep.mubr.f32.mxu1 %v71_v35 }
  0x3f   :  { %230 = vmatmul.mubr.f32.vlgmr.msra.gmra.mxu1 %v70_v36  ;;  %1108 = vmatprep.subr.mxu1 %v302_v37 }
  0x40   :  { %234 = vmatprep.mubr.f32.mxu1 %v73_v38  ;;  %1109 = vmatpush3.msra.mxu1 %v302_v37  ;;  %v501_v38 = vld [vmem:[#allocation5 + $0x70] sm:$0xff] }
  0x41   :  { %195 = vmatmul.mubr.f32.gmra.mxu0 %v56_v39  ;;  %1110 = vmatprep.subr.mxu1 %v301_v40 }
  0x42   :  { %199 = vmatprep.mubr.f32.mxu0 %v59_v41  ;;  %1111 = vmatpush3.msra.mxu1 %v301_v40 }
  0x43   :  { %235 = vmatmul.mubr.f32.gmra.mxu1 %v72_v42  ;;  %1112 = vmatprep.subr.mxu1 %v300_v43  ;;  %v500_v42 = vld [vmem:[#allocation5 + $0x68] sm:$0xff] }
  0x44   :  { %239 = vmatprep.mubr.f32.mxu1 %v75_v44  ;;  %1113 = vmatpush3.msra.mxu1 %v300_v43 }
  0x45   :  { %200 = vmatmul.mubr.f32.gmra.mxu0 %v58_v45  ;;  %1114 = vmatprep.subr.mxu1 %v299_v46 }
  0x46   :  { %204 = vmatprep.mubr.f32.mxu0 %v61_v47  ;;  %1115 = vmatpush3.msra.mxu1 %v299_v46  ;;  %v499_v47 = vld [vmem:[#allocation5 + $0x60] sm:$0xff] }
  0x47   :  { %240 = vmatmul.mubr.f32.gmra.mxu1 %v74_v48  ;;  %1116 = vmatprep.subr.mxu1 %v298_v49 }
  0x48   :  { %244 = vmatprep.mubr.f32.mxu1 %v77_v50  ;;  %1117 = vmatpush3.msra.mxu1 %v298_v49 }
  0x49   :  { %205 = vmatmul.mubr.f32.gmra.mxu0 %v60_v51  ;;  %1118 = vmatprep.subr.mxu1 %v297_v52  ;;  %v498_v51 = vld [vmem:[#allocation5 + $0x58] sm:$0xff] }
  0x4a   :  { %209 = vmatprep.mubr.f32.mxu0 %v63_v53  ;;  %1119 = vmatpush3.msra.mxu1 %v297_v52 }
  0x4b   :  { %245 = vmatmul.mubr.f32.gmra.mxu1 %v76_v54  ;;  %1120 = vmatprep.subr.mxu1 %v296_v55 }
  0x4c   :  { %249 = vmatprep.mubr.f32.mxu1 %v79_v56  ;;  %1121 = vmatpush3.msra.mxu1 %v296_v55  ;;  %v497_v56 = vld [vmem:[#allocation5 + $0x50] sm:$0xff] }
  0x4d   :  { %210 = vmatmul.mubr.f32.gmra.mxu0 %v62_v57  ;;  %1122 = vmatprep.subr.mxu1 %v295_v58 }
  0x4e   :  { %214 = vmatprep.mubr.f32.mxu0 %v65_v59  ;;  %1123 = vmatpush3.msra.mxu1 %v295_v58 }
  0x4f   :  { %250 = vmatmul.mubr.f32.gmra.mxu1 %v78_v60  ;;  %1124 = vmatprep.subr.mxu1 %v294_v61  ;;  %v496_v60 = vld [vmem:[#allocation5 + $0x48] sm:$0xff] }
  0x50   :  { %254 = vmatprep.mubr.f32.mxu1 %v81_v62  ;;  %1125 = vmatpush3.msra.mxu1 %v294_v61 }
  0x51   :  { %215 = vmatmul.mubr.f32.gmra.mxu0 %v64_v63  ;;  %1126 = vmatprep.subr.mxu1 %v293_v0 }
  0x52   :  { %219 = vmatprep.mubr.f32.mxu0 %v67_v1  ;;  %1127 = vmatpush3.msra.mxu1 %v293_v0  ;;  %v495_v1 = vld [vmem:[#allocation5 + $0x40] sm:$0xff] }
  0x53   :  { %255 = vmatmul.mubr.f32.gmra.mxu1 %v80_v2  ;;  %1128 = vmatprep.subr.mxu1 %v292_v10 }
  0x54   :  { %259 = vmatprep.mubr.f32.mxu1 %v83_v3  ;;  %1129 = vmatpush3.msra.mxu1 %v292_v10  ;;  %v493_v10 = vld [vmem:[#allocation5 + $0x30] sm:$0xff] }
  0x55   :  { %220 = vmatmul.mubr.f32.gmra.mxu0 %v66_v4  ;;  %1130 = vmatprep.subr.mxu1 %v291_v11 }
  0x56   :  { %224 = vmatprep.mubr.f32.mxu0 %v69_v5  ;;  %1131 = vmatpush3.msra.mxu1 %v291_v11 }
  0x57   :  { %260 = vmatmul.mubr.f32.gmra.mxu1 %v82_v6  ;;  %1132 = vmatprep.subr.mxu1 %v290_v12  ;;  %v494_v6 = vld [vmem:[#allocation5 + $0x38] sm:$0xff] }
  0x58   :  { %264 = vmatprep.mubr.f32.mxu1 %v85_v7  ;;  %1133 = vmatpush3.msra.mxu1 %v290_v12 }
  0x59   :  { %225 = vmatmul.mubr.f32.gmra.mxu0 %v68_v8  ;;  %1134 = vmatprep.subr.mxu1 %v289_v13 }
  0x5a   :  { %1135 = vmatpush3.msra.mxu1 %v289_v13 }
  0x5b   :  { %265 = vmatmul.mubr.f32.gmra.mxu1 %v84_v9  ;;  %1136 = vmatprep.subr.mxu1 %v288_v14 }
  0x5c   :  { %1137 = vmatpush3.msra.mxu1 %v288_v14 }
  0x5d   :  { %1138 = vmatprep.subr.mxu1 %v287_v15 }
  0x5e   :  { %1139 = vmatpush3.msra.mxu1 %v287_v15 }
  0x5f   :  { %1164 = vmatprep.subr.mxu1 %v502_v16 }
  0xfd   :  { %v996_v17 = vpop.f32.mrf.mxu0 }
  0xff   :  { %v997_v19 = vpop.f32.mrf.mxu0  ;;  %v1529_v20 = vpop.f32.mrf.mxu1 }
 0x100   :  { %v998_v21 = vadd.f32 %v997_v19, %v996_v17  ;;  %v492_v17 = vld [vmem:[#allocation5 + $0x28] sm:$0xff] }
 0x101   :  { %v999_v22 = vpop.f32.mrf.mxu0  ;;  %v1021_v23 = vpop.f32.mrf.mxu1 }
 0x102   :  { %v192_v24 = vadd.f32 %v998_v21, %v1527_v18  ;;  %v1022_v4 = vadd.f32 %v1021_v23, %v1529_v20  ;;  %v491_v21 = vld [vmem:[#allocation5 + $0x20] sm:$0xff] }
 0x103   :  { %v1000_v25 = vpop.f32.mrf.mxu0  ;;  %v1532_v26 = vpop.f32.mrf.mxu1 }
 0x104   :  { %v270_v27 = vmax.f32 %v192_v24, 0.0  ;;  %v1001_v28 = vadd.f32 %v1000_v25, %v999_v22  ;;  %v232_v13 = vadd.f32 %v1022_v4, %v1527_v18  ;;  %v683_v4 = vld [vmem:[%s1814_s4 + $0x60] sm:$0xff] }
 0x105   :  { %v1002_v29 = vpop.f32.mrf.mxu0  ;;  %v1534_v30 = vpop.f32.mrf.mxu1 }
 0x106   :  { %v197_v31 = vadd.f32 %v1001_v28, %v1527_v18  ;;  %1140 = vmatprep.mubr.f32.mxu1 %v270_v27  ;;  %v1025_v12 = vadd.f32 %v1534_v30, %v1532_v26  ;;  %v278_v25 = vmax.f32 %v232_v13, 0.0 }
 0x107   :  { %v1003_v32 = vpop.f32.mrf.mxu0  ;;  %v1537_v33 = vpop.f32.mrf.mxu1 }
 0x108   :  { %v271_v34 = vmax.f32 %v197_v31, 0.0  ;;  %v1004_v35 = vadd.f32 %v1003_v32, %v1002_v29  ;;  %v237_v23 = vadd.f32 %v1025_v12, %v1527_v18  ;;  %v490_v29 = vld [vmem:[#allocation5 + $0x18] sm:$0xff] }
 0x109   :  { %v1005_v36 = vpop.f32.mrf.mxu0  ;;  %v1539_v37 = vpop.f32.mrf.mxu1 }
 0x10a   :  { %v202_v39 = vadd.f32 %v1004_v35, %v1527_v18  ;;  %1141 = vmatmul.mubr.f32.vlgmr.msra.gmra.mxu1 %v271_v34  ;;  %v1028_v15 = vadd.f32 %v1539_v37, %v1537_v33  ;;  %v279_v31 = vmax.f32 %v237_v23, 0.0 }
 0x10b   :  { %v1006_v40 = vpop.f32.mrf.mxu0  ;;  %v1542_v41 = vpop.f32.mrf.mxu1  ;;  %1165 = vmatpush3.msra.mxu1 %v502_v16 }
 0x10c   :  { %v272_v43 = vmax.f32 %v202_v39, 0.0  ;;  %v1007_v44 = vadd.f32 %v1006_v40, %v1005_v36  ;;  %1166 = vmatprep.subr.mxu1 %v501_v38  ;;  %v242_v26 = vadd.f32 %v1028_v15, %v1527_v18 }
 0x10d   :  { %v1008_v45 = vpop.f32.mrf.mxu0  ;;  %v1544_v46 = vpop.f32.mrf.mxu1  ;;  %1167 = vmatpush3.msra.mxu1 %v501_v38 }
 0x10e   :  { %v207_v48 = vadd.f32 %v1007_v44, %v1527_v18  ;;  %1143 = vmatprep.mubr.f32.mxu1 %v272_v43  ;;  %1168 = vmatprep.subr.mxu1 %v500_v42  ;;  %v1031_v24 = vadd.f32 %v1544_v46, %v1542_v41  ;;  %v280_v34 = vmax.f32 %v242_v26, 0.0 }
 0x10f   :  { %v1009_v49 = vpop.f32.mrf.mxu0  ;;  %v1032_v50 = vpop.f32.mrf.mxu1  ;;  %1169 = vmatpush3.msra.mxu1 %v500_v42 }
 0x110   :  { %v273_v52 = vmax.f32 %v207_v48, 0.0  ;;  %v1010_v53 = vadd.f32 %v1009_v49, %v1008_v45  ;;  %1170 = vmatprep.subr.mxu1 %v499_v47  ;;  %v247_v32 = vadd.f32 %v1031_v24, %v1527_v18  ;;  %v488_v48 = vld [vmem:[#allocation5 + $0x8] sm:$0xff]  ;;  %v487_v49 = vld [vmem:[#allocation5] sm:$0xff] }
 0x111   :  { %v1011_v54 = vpop.f32.mrf.mxu0  ;;  %v1033_v55 = vpop.f32.mrf.mxu1  ;;  %1171 = vmatpush3.msra.mxu1 %v499_v47  ;;  %v489_v47 = vld [vmem:[#allocation5 + $0x10] sm:$0xff] }
 0x112   :  { %v212_v57 = vadd.f32 %v1010_v53, %v1527_v18  ;;  %1144 = vmatmul.mubr.f32.gmra.mxu1 %v273_v52  ;;  %1172 = vmatprep.subr.mxu1 %v498_v51  ;;  %v1034_v27 = vadd.f32 %v1033_v55, %v1032_v50  ;;  %v281_v38 = vmax.f32 %v247_v32, 0.0  ;;  %v702_v50 = vld [vmem:[%s1814_s4 + $0xf8] sm:$0xff]  ;;  %v699_v52 = vld [vmem:[%s1814_s4 + $0xe0] sm:$0xff]  ;;  %v696_v55 = vld [vmem:[%s1814_s4 + $0xc8] sm:$0xff] }
 0x113   :  { %v1012_v58 = vpop.f32.mrf.mxu0  ;;  %v1035_v59 = vpop.f32.mrf.mxu1  ;;  %1173 = vmatpush3.msra.mxu1 %v498_v51  ;;  %v700_v51 = vld [vmem:[%s1814_s4 + $0xe8] sm:$0xff]  ;;  %714 = vmatprep.subr.mxu0 %v702_v50  ;;  %v698_v53 = vld [vmem:[%s1814_s4 + $0xd8] sm:$0xff] }
 0x114   :  { %v274_v61 = vmax.f32 %v212_v57, 0.0  ;;  %v1013_v62 = vadd.f32 %v1012_v58, %v1011_v54  ;;  %1174 = vmatprep.subr.mxu1 %v497_v56  ;;  %v252_v35 = vadd.f32 %v1034_v27, %v1527_v18  ;;  %v697_v54 = vld [vmem:[%s1814_s4 + $0xd0] sm:$0xff]  ;;  %v694_v57 = vld [vmem:[%s1814_s4 + $0xb8] sm:$0xff] }
 0x115   :  { %v1014_v63 = vpop.f32.mrf.mxu0  ;;  %v1036_v0 = vpop.f32.mrf.mxu1  ;;  %1175 = vmatpush3.msra.mxu1 %v497_v56  ;;  %v695_v56 = vld [vmem:[%s1814_s4 + $0xc0] sm:$0xff]  ;;  %v693_v58 = vld [vmem:[%s1814_s4 + $0xb0] sm:$0xff] }
 0x116   :  { %v217_v2 = vadd.f32 %v1013_v62, %v1527_v18  ;;  %1146 = vmatprep.mubr.f32.mxu1 %v274_v61  ;;  %1176 = vmatprep.subr.mxu1 %v496_v60  ;;  %v1037_v33 = vadd.f32 %v1036_v0, %v1035_v59  ;;  %v282_v41 = vmax.f32 %v252_v35, 0.0  ;;  %v692_v59 = vld [vmem:[%s1814_s4 + $0xa8] sm:$0xff]  ;;  %v690_v61 = vld [vmem:[%s1814_s4 + $0x98] sm:$0xff]  ;;  %v689_v62 = vld [vmem:[%s1814_s4 + $0x90] sm:$0xff] }
 0x117   :  { %v1015_v3 = vpop.f32.mrf.mxu0  ;;  %v1038_v5 = vpop.f32.mrf.mxu1  ;;  %1177 = vmatpush3.msra.mxu1 %v496_v60  ;;  %v691_v60 = vld [vmem:[%s1814_s4 + $0xa0] sm:$0xff] }
 0x118   :  { %v275_v7 = vmax.f32 %v217_v2, 0.0  ;;  %v1016_v8 = vadd.f32 %v1015_v3, %v1014_v63  ;;  %1178 = vmatprep.subr.mxu1 %v495_v1  ;;  %v257_v39 = vadd.f32 %v1037_v33, %v1527_v18  ;;  %v688_v63 = vld [vmem:[%s1814_s4 + $0x88] sm:$0xff]  ;;  %v687_v0 = vld [vmem:[%s1814_s4 + $0x80] sm:$0xff]  ;;  %v685_v2 = vld [vmem:[%s1814_s4 + $0x70] sm:$0xff] }
 0x119   :  { %v1017_v9 = vpop.f32.mrf.mxu0  ;;  %1179 = vmatpush3.msra.mxu1 %v495_v1  ;;  %v1039_v16 = vpop.f32.mrf.mxu1  ;;  %v686_v1 = vld [vmem:[%s1814_s4 + $0x78] sm:$0xff]  ;;  %v684_v3 = vld [vmem:[%s1814_s4 + $0x68] sm:$0xff] }
 0x11a   :  { %v222_v11 = vadd.f32 %v1016_v8, %v1527_v18  ;;  %1147 = vmatmul.mubr.f32.gmra.mxu1 %v275_v7  ;;  %1180 = vmatprep.subr.mxu1 %v494_v6  ;;  %v1040_v36 = vadd.f32 %v1039_v16, %v1038_v5  ;;  %v283_v43 = vmax.f32 %v257_v39, 0.0  ;;  %v682_v5 = vld [vmem:[%s1814_s4 + $0x58] sm:$0xff]  ;;  %v680_v7 = vld [vmem:[%s1814_s4 + $0x48] sm:$0xff]  ;;  %v679_v8 = vld [vmem:[%s1814_s4 + $0x40] sm:$0xff] }
 0x11b   :  { %v1018_v14 = vpop.f32.mrf.mxu0  ;;  %1181 = vmatpush3.msra.mxu1 %v494_v6  ;;  %v1041_v28 = vpop.f32.mrf.mxu1  ;;  %v681_v6 = vld [vmem:[%s1814_s4 + $0x50] sm:$0xff] }
 0x11c   :  { %v276_v19 = vmax.f32 %v222_v11, 0.0  ;;  %v1019_v20 = vadd.f32 %v1018_v14, %v1017_v9  ;;  %1182 = vmatprep.subr.mxu1 %v493_v10  ;;  %v262_v42 = vadd.f32 %v1040_v36, %v1527_v18  ;;  %v678_v9 = vld [vmem:[%s1814_s4 + $0x38] sm:$0xff]  ;;  %v1647_v11 = vld [vmem:[%s1815_s5 + $0x1] ss:$0 sm:$0xff] }
 0x11d   :  { %1183 = vmatpush3.msra.mxu1 %v493_v10  ;;  %v1042_v37 = vpop.f32.mrf.mxu1  ;;  %v677_v10 = vld [vmem:[%s1814_s4 + $0x30] sm:$0xff] }
 0x11e   :  { %v227_v22 = vadd.f32 %v1019_v20, %v1527_v18  ;;  %1149 = vmatprep.mubr.f32.mxu1 %v276_v19  ;;  %1184 = vmatprep.subr.mxu1 %v492_v17  ;;  %v1043_v40 = vadd.f32 %v1042_v37, %v1041_v28  ;;  %v284_v45 = vmax.f32 %v262_v42, 0.0 }
 0x11f   :  { %1185 = vmatpush3.msra.mxu1 %v492_v17 }
 0x120   :  { %v277_v30 = vmax.f32 %v227_v22, 0.0  ;;  %1186 = vmatprep.subr.mxu1 %v491_v21  ;;  %v267_v44 = vadd.f32 %v1043_v40, %v1527_v18  ;;  %v701_v18 = vld [vmem:[%s1814_s4 + $0xf0] sm:$0xff] }
 0x121   :  { %1187 = vmatpush3.msra.mxu1 %v491_v21  ;;  %715 = vmatpush1.msra.mxu0 %v701_v18 }
 0x122   :  { %1150 = vmatmul.mubr.f32.gmra.mxu1 %v277_v30  ;;  %1188 = vmatprep.subr.mxu1 %v490_v29  ;;  %v285_v46 = vmax.f32 %v267_v44, 0.0 }
 0x123   :  { %1152 = vmatprep.mubr.f32.mxu1 %v278_v25  ;;  %1189 = vmatpush3.msra.mxu1 %v490_v29 }
 0x124   :  { %1190 = vmatprep.subr.mxu1 %v489_v47  ;;  %716 = vmatprep.subr.mxu0 %v700_v51 }
 0x125   :  { %1191 = vmatpush3.msra.mxu1 %v489_v47  ;;  %717 = vmatpush1.msra.mxu0 %v699_v52 }
 0x126   :  { %1153 = vmatmul.mubr.f32.gmra.mxu1 %v279_v31  ;;  %1192 = vmatprep.subr.mxu1 %v488_v48 }
 0x127   :  { %1155 = vmatprep.mubr.f32.mxu1 %v280_v34  ;;  %1193 = vmatpush3.msra.mxu1 %v488_v48 }
 0x128   :  { %1194 = vmatprep.subr.mxu1 %v487_v49  ;;  %718 = vmatprep.subr.mxu0 %v698_v53 }
 0x129   :  { %1195 = vmatpush3.msra.mxu1 %v487_v49  ;;  %719 = vmatpush1.msra.mxu0 %v697_v54 }
 0x12a   :  { %1156 = vmatmul.mubr.f32.gmra.mxu1 %v281_v38  ;;  %720 = vmatprep.subr.mxu0 %v696_v55 }
 0x12b   :  { %1158 = vmatprep.mubr.f32.mxu1 %v282_v41  ;;  %721 = vmatpush1.msra.mxu0 %v695_v56 }
 0x12c   :  { %722 = vmatprep.subr.mxu0 %v694_v57 }
 0x12d   :  { %723 = vmatpush1.msra.mxu0 %v693_v58 }
 0x12e   :  { %1159 = vmatmul.mubr.f32.gmra.mxu1 %v283_v43  ;;  %724 = vmatprep.subr.mxu0 %v692_v59 }
 0x12f   :  { %1161 = vmatprep.mubr.f32.mxu1 %v284_v45  ;;  %725 = vmatpush1.msra.mxu0 %v691_v60  ;;  %v676_v60 = vld [vmem:[%s1814_s4 + $0x28] sm:$0xff] }
 0x130   :  { %726 = vmatprep.subr.mxu0 %v690_v61  ;;  %v675_v61 = vld [vmem:[%s1814_s4 + $0x20] sm:$0xff] }
 0x131   :  { %727 = vmatpush1.msra.mxu0 %v689_v62  ;;  %v674_v62 = vld [vmem:[%s1814_s4 + $0x18] sm:$0xff] }
 0x132   :  { %1162 = vmatmul.mubr.f32.gmra.mxu1 %v285_v46  ;;  %728 = vmatprep.subr.mxu0 %v688_v63  ;;  %v673_v63 = vld [vmem:[%s1814_s4 + $0x10] sm:$0xff] }
 0x133   :  { %729 = vmatpush1.msra.mxu0 %v687_v0  ;;  %v672_v0 = vld [vmem:[%s1814_s4 + $0x8] sm:$0xff] }
 0x134   :  { %730 = vmatprep.subr.mxu0 %v686_v1  ;;  %v671_v1 = vld [vmem:[%s1814_s4] sm:$0xff] }
 0x135   :  { %731 = vmatpush1.msra.mxu0 %v685_v2  ;;  %v1330_v2 = vmov 0.0  }
 0x136   :  { %732 = vmatprep.subr.mxu0 %v684_v3  ;;  %778 = vmatprep.mubr.f32.mxu0 %v1330_v2 }
 0x137   :  { %733 = vmatpush1.msra.mxu0 %v683_v4  ;;  %v1735_v4 = vld [vmem:[%s1815_s5 + $0x2] ss:$0 sm:$0xff] }
 0x138   :  { %734 = vmatprep.subr.mxu0 %v682_v5 }
 0x139   :  { %735 = vmatpush1.msra.mxu0 %v681_v6 }
 0x13a   :  { %736 = vmatprep.subr.mxu0 %v680_v7 }
 0x13b   :  { %737 = vmatpush1.msra.mxu0 %v679_v8 }
 0x13c   :  { %738 = vmatprep.subr.mxu0 %v678_v9 }
 0x13d   :  { %739 = vmatpush1.msra.mxu0 %v677_v10 }
 0x13e   :  { %740 = vmatprep.subr.mxu0 %v676_v60 }
 0x13f   :  { %741 = vmatpush1.msra.mxu0 %v675_v61 }
 0x140   :  { %742 = vmatprep.subr.mxu0 %v674_v62 }
 0x141   :  { %743 = vmatpush1.msra.mxu0 %v673_v63 }
 0x142   :  { %744 = vmatprep.subr.mxu0 %v672_v0 }
 0x143   :  { %745 = vmatpush1.msra.mxu0 %v671_v1 }
 0x1ca   :  { %v1142_v12 = vpop.f32.mrf.mxu1 }
 0x1cb   :  { %v381_v13 = vadd.f32 %v1142_v12, %v1647_v11 }
 0x1cc   :  { %v375_v14 = vpop.f32.mrf.mxu1 }
 0x1cd   :  { %v455_v15 = vmax.f32 %v381_v13, 0.0  ;;  %v376_v16 = vadd.f32 %v1647_v11, %v375_v14 }
 0x1cf   :  { %471 = vst [vmem:[%s1816_s6 + $0x8] sm:$0xff] %v455_v15  ;;  %v454_v17 = vmax.f32 %v376_v16, 0.0 }
 0x1d1   :  { %470 = vst [vmem:[%s1816_s6] sm:$0xff] %v454_v17  ;;  %1196 = vmatprep.mubr.f32.mxu1 %v454_v17 }
 0x1d2   :  { %v1145_v19 = vpop.f32.mrf.mxu1  ;;  %1197 = vmatmul.mubr.f32.vlgmr.msra.gmra.mxu1 %v455_v15 }
 0x1d3   :  { %v391_v20 = vadd.f32 %v1145_v19, %v1647_v11 }
 0x1d4   :  { %v385_v21 = vpop.f32.mrf.mxu1 }
 0x1d5   :  { %v457_v22 = vmax.f32 %v391_v20, 0.0  ;;  %v386_v23 = vadd.f32 %v1647_v11, %v385_v21 }
 0x1d7   :  { %473 = vst [vmem:[%s1816_s6 + $0x18] sm:$0xff] %v457_v22  ;;  %v456_v24 = vmax.f32 %v386_v23, 0.0 }
 0x1d9   :  { %472 = vst [vmem:[%s1816_s6 + $0x10] sm:$0xff] %v456_v24  ;;  %1199 = vmatprep.mubr.f32.mxu1 %v456_v24 }
 0x1da   :  { %v1148_v25 = vpop.f32.mrf.mxu1  ;;  %1200 = vmatmul.mubr.f32.gmra.mxu1 %v457_v22 }
 0x1db   :  { %v401_v26 = vadd.f32 %v1148_v25, %v1647_v11 }
 0x1dc   :  { %v395_v27 = vpop.f32.mrf.mxu1 }
 0x1dd   :  { %v459_v28 = vmax.f32 %v401_v26, 0.0  ;;  %v396_v29 = vadd.f32 %v1647_v11, %v395_v27 }
 0x1df   :  { %475 = vst [vmem:[%s1816_s6 + $0x28] sm:$0xff] %v459_v28  ;;  %v458_v30 = vmax.f32 %v396_v29, 0.0 }
 0x1e1   :  { %474 = vst [vmem:[%s1816_s6 + $0x20] sm:$0xff] %v458_v30  ;;  %1202 = vmatprep.mubr.f32.mxu1 %v458_v30 }
 0x1e2   :  { %v1151_v31 = vpop.f32.mrf.mxu1  ;;  %1203 = vmatmul.mubr.f32.gmra.mxu1 %v459_v28 }
 0x1e3   :  { %v411_v32 = vadd.f32 %v1151_v31, %v1647_v11 }
 0x1e4   :  { %v405_v33 = vpop.f32.mrf.mxu1 }
 0x1e5   :  { %v461_v34 = vmax.f32 %v411_v32, 0.0  ;;  %v406_v35 = vadd.f32 %v1647_v11, %v405_v33 }
 0x1e6   :  { %v1154_v36 = vpop.f32.mrf.mxu1 }
 0x1e7   :  { %477 = vst [vmem:[%s1816_s6 + $0x38] sm:$0xff] %v461_v34  ;;  %v460_v37 = vmax.f32 %v406_v35, 0.0  ;;  %v421_v38 = vadd.f32 %v1154_v36, %v1647_v11 }
 0x1e8   :  { %v415_v39 = vpop.f32.mrf.mxu1 }
 0x1e9   :  { %476 = vst [vmem:[%s1816_s6 + $0x30] sm:$0xff] %v460_v37  ;;  %v463_v40 = vmax.f32 %v421_v38, 0.0  ;;  %v416_v41 = vadd.f32 %v1647_v11, %v415_v39  ;;  %1205 = vmatprep.mubr.f32.mxu1 %v460_v37 }
 0x1ea   :  { %1206 = vmatmul.mubr.f32.gmra.mxu1 %v461_v34  ;;  %v1157_v42 = vpop.f32.mrf.mxu1 }
 0x1eb   :  { %479 = vst [vmem:[%s1816_s6 + $0x48] sm:$0xff] %v463_v40  ;;  %v462_v43 = vmax.f32 %v416_v41, 0.0  ;;  %v431_v44 = vadd.f32 %v1157_v42, %v1647_v11 }
 0x1ec   :  { %v425_v45 = vpop.f32.mrf.mxu1 }
 0x1ed   :  { %478 = vst [vmem:[%s1816_s6 + $0x40] sm:$0xff] %v462_v43  ;;  %v465_v46 = vmax.f32 %v431_v44, 0.0  ;;  %v426_v47 = vadd.f32 %v1647_v11, %v425_v45  ;;  %1208 = vmatprep.mubr.f32.mxu1 %v462_v43 }
 0x1ee   :  { %1209 = vmatmul.mubr.f32.gmra.mxu1 %v463_v40  ;;  %v1160_v48 = vpop.f32.mrf.mxu1 }
 0x1ef   :  { %481 = vst [vmem:[%s1816_s6 + $0x58] sm:$0xff] %v465_v46  ;;  %v464_v49 = vmax.f32 %v426_v47, 0.0  ;;  %v441_v50 = vadd.f32 %v1160_v48, %v1647_v11 }
 0x1f0   :  { %v435_v18 = vpop.f32.mrf.mxu1 }
 0x1f1   :  { %480 = vst [vmem:[%s1816_s6 + $0x50] sm:$0xff] %v464_v49  ;;  %1211 = vmatprep.mubr.f32.mxu1 %v464_v49  ;;  %v467_v51 = vmax.f32 %v441_v50, 0.0  ;;  %v436_v52 = vadd.f32 %v1647_v11, %v435_v18 }
 0x1f2   :  { %1212 = vmatmul.mubr.f32.gmra.mxu1 %v465_v46  ;;  %v1163_v53 = vpop.f32.mrf.mxu1 }
 0x1f3   :  { %483 = vst [vmem:[%s1816_s6 + $0x68] sm:$0xff] %v467_v51  ;;  %v466_v54 = vmax.f32 %v436_v52, 0.0  ;;  %v451_v55 = vadd.f32 %v1163_v53, %v1647_v11  ;;  %v704_v52 = vlaneseq }
 0x1f4   :  { %v445_v56 = vpop.f32.mrf.mxu1 }
 0x1f5   :  { %482 = vst [vmem:[%s1816_s6 + $0x60] sm:$0xff] %v466_v54  ;;  %1214 = vmatprep.mubr.f32.mxu1 %v466_v54  ;;  %v469_v57 = vmax.f32 %v451_v55, 0.0  ;;  %v446_v58 = vadd.f32 %v1647_v11, %v445_v56  ;;  %v705_v53 = vshrl.u32 %v704_v52, 7  ;;  %v670_v55 = vld [vmem:[%s1815_s5 + $0x3] sm:$0x3]  ;;  %s1331_s5 = smov [#allocation7]  }
 0x1f6   :  { %1215 = vmatmul.mubr.f32.gmra.mxu1 %v467_v51  ;;  %s946_s0 = sshll.u32 %s1331_s5, 4  ;;  %s947_s0 = int_to_ptr.vmem [resolvable:$true] %s946_s0 }
 0x1f7   :  { %485 = vst [vmem:[%s1816_s6 + $0x78] sm:$0xff] %v469_v57  ;;  %v468_v59 = vmax.f32 %v446_v58, 0.0  ;;  %v706_v54 = vsub.s32 0, %v705_v53  ;;  %v710_v56 = vsub.s32 1, %v705_v53  ;;  %s1300_s26 = scalar_lea.vmem %s947_s0, 4096  ;;  %p1305_p11 = scmp.lt.s32.totalorder %s947_s0, %s947_s0 }
 0x1f8   :  { %p1301_p10 = scmp.ne.s32.totalorder %s947_s0, %s1300_s26  ;;  %p1306_p12 = scmp.lt.s32.totalorder %s1300_s26, %s1300_s26 }
 0x1f9   :  { %484 = vst [vmem:[%s1816_s6 + $0x70] sm:$0xff] %v468_v59  ;;  %1217 = vmatprep.mubr.f32.mxu1 %v468_v59  ;;  %v1773_v58 = vrot.slane %v670_v55, %v710_v56 }
 0x1fa   :  { %1218 = vmatmul.mubr.f32.gmra.mxu1 %v469_v57  ;;  %v1771_v57 = vrot.slane %v670_v55, %v706_v54  ;;  %p1307_p13 = por %p1306_p12, %p1305_p11 }
 0x1fc   :  { %p1308_p0 = pnand %p1307_p13, %p1301_p10 }
 0x292   :  { %v1198_v3 = vpop.f32.mrf.mxu1 }
 0x293   :  { %v581_v7 = vadd.f32 %v1198_v3, %v1735_v4 }
 0x294   :  { %v575_v5 = vpop.f32.mrf.mxu1 }
 0x295   :  { %v576_v6 = vadd.f32 %v1735_v4, %v575_v5  ;;  %v655_v10 = vmax.f32 %v581_v7, 0.0 }
 0x297   :  { %v654_v8 = vmax.f32 %v576_v6, 0.0 }
 0x299   :  { %779 = vmatmul.mubr.f32.vlgmr.msra.gmra.mxu0 %v654_v8 }
 0x29a   :  { %v1201_v9 = vpop.f32.mrf.mxu1  ;;  %784 = vmatprep.mubr.f32.mxu0 %v1330_v2 }
 0x29b   :  { %v591_v13 = vadd.f32 %v1201_v9, %v1735_v4 }
 0x29c   :  { %v585_v11 = vpop.f32.mrf.mxu1 }
 0x29d   :  { %v586_v12 = vadd.f32 %v1735_v4, %v585_v11  ;;  %785 = vmatmul.mubr.f32.gmra.mxu0 %v655_v10  ;;  %v657_v16 = vmax.f32 %v591_v13, 0.0 }
 0x29e   :  { %790 = vmatprep.mubr.f32.mxu0 %v1330_v2 }
 0x29f   :  { %v656_v14 = vmax.f32 %v586_v12, 0.0 }
 0x2a1   :  { %791 = vmatmul.mubr.f32.gmra.mxu0 %v656_v14 }
 0x2a2   :  { %v1204_v15 = vpop.f32.mrf.mxu1  ;;  %796 = vmatprep.mubr.f32.mxu0 %v1330_v2 }
 0x2a3   :  { %v601_v20 = vadd.f32 %v1204_v15, %v1735_v4 }
 0x2a4   :  { %v595_v17 = vpop.f32.mrf.mxu1 }
 0x2a5   :  { %v596_v19 = vadd.f32 %v1735_v4, %v595_v17  ;;  %797 = vmatmul.mubr.f32.gmra.mxu0 %v657_v16  ;;  %v659_v23 = vmax.f32 %v601_v20, 0.0 }
 0x2a6   :  { %802 = vmatprep.mubr.f32.mxu0 %v1330_v2 }
 0x2a7   :  { %v658_v21 = vmax.f32 %v596_v19, 0.0 }
 0x2a9   :  { %803 = vmatmul.mubr.f32.gmra.mxu0 %v658_v21 }
 0x2aa   :  { %v1207_v22 = vpop.f32.mrf.mxu1  ;;  %808 = vmatprep.mubr.f32.mxu0 %v1330_v2 }
 0x2ab   :  { %v611_v27 = vadd.f32 %v1207_v22, %v1735_v4 }
 0x2ac   :  { %v605_v24 = vpop.f32.mrf.mxu1 }
 0x2ad   :  { %v606_v25 = vadd.f32 %v1735_v4, %v605_v24  ;;  %809 = vmatmul.mubr.f32.gmra.mxu0 %v659_v23  ;;  %v661_v30 = vmax.f32 %v611_v27, 0.0 }
 0x2ae   :  { %v1210_v26 = vpop.f32.mrf.mxu1  ;;  %814 = vmatprep.mubr.f32.mxu0 %v1330_v2 }
 0x2af   :  { %v660_v28 = vmax.f32 %v606_v25, 0.0  ;;  %v621_v33 = vadd.f32 %v1210_v26, %v1735_v4 }
 0x2b0   :  { %v615_v29 = vpop.f32.mrf.mxu1 }
 0x2b1   :  { %815 = vmatmul.mubr.f32.gmra.mxu0 %v660_v28  ;;  %v616_v31 = vadd.f32 %v1735_v4, %v615_v29  ;;  %v663_v36 = vmax.f32 %v621_v33, 0.0 }
 0x2b2   :  { %820 = vmatprep.mubr.f32.mxu0 %v1330_v2  ;;  %v1213_v32 = vpop.f32.mrf.mxu1 }
 0x2b3   :  { %v662_v34 = vmax.f32 %v616_v31, 0.0  ;;  %v631_v39 = vadd.f32 %v1213_v32, %v1735_v4 }
 0x2b4   :  { %v625_v35 = vpop.f32.mrf.mxu1 }
 0x2b5   :  { %821 = vmatmul.mubr.f32.gmra.mxu0 %v661_v30  ;;  %v626_v37 = vadd.f32 %v1735_v4, %v625_v35  ;;  %v665_v42 = vmax.f32 %v631_v39, 0.0 }
 0x2b6   :  { %826 = vmatprep.mubr.f32.mxu0 %v1330_v2  ;;  %v1216_v38 = vpop.f32.mrf.mxu1 }
 0x2b7   :  { %v664_v40 = vmax.f32 %v626_v37, 0.0  ;;  %v641_v45 = vadd.f32 %v1216_v38, %v1735_v4 }
 0x2b8   :  { %v635_v41 = vpop.f32.mrf.mxu1 }
 0x2b9   :  { %827 = vmatmul.mubr.f32.gmra.mxu0 %v662_v34  ;;  %v636_v43 = vadd.f32 %v1735_v4, %v635_v41  ;;  %v667_v48 = vmax.f32 %v641_v45, 0.0 }
 0x2ba   :  { %832 = vmatprep.mubr.f32.mxu0 %v1330_v2  ;;  %v1219_v44 = vpop.f32.mrf.mxu1 }
 0x2bb   :  { %v666_v46 = vmax.f32 %v636_v43, 0.0  ;;  %v651_v50 = vadd.f32 %v1219_v44, %v1735_v4 }
 0x2bc   :  { %v645_v47 = vpop.f32.mrf.mxu1 }
 0x2bd   :  { %833 = vmatmul.mubr.f32.gmra.mxu0 %v663_v36  ;;  %v646_v49 = vadd.f32 %v1735_v4, %v645_v47  ;;  %v669_v51 = vmax.f32 %v651_v50, 0.0 }
 0x2be   :  { %838 = vmatprep.mubr.f32.mxu0 %v1330_v2 }
 0x2bf   :  { %v668_v18 = vmax.f32 %v646_v49, 0.0 }
 0x2c1   :  { %839 = vmatmul.mubr.f32.gmra.mxu0 %v664_v40 }
 0x2c2   :  { %844 = vmatprep.mubr.f32.mxu0 %v1330_v2 }
 0x2c5   :  { %845 = vmatmul.mubr.f32.gmra.mxu0 %v665_v42 }
 0x2c6   :  { %850 = vmatprep.mubr.f32.mxu0 %v1330_v2 }
 0x2c9   :  { %851 = vmatmul.mubr.f32.gmra.mxu0 %v666_v46 }
 0x2ca   :  { %856 = vmatprep.mubr.f32.mxu0 %v1330_v2 }
 0x2cd   :  { %857 = vmatmul.mubr.f32.gmra.mxu0 %v667_v48 }
 0x2ce   :  { %862 = vmatprep.mubr.f32.mxu0 %v1330_v2 }
 0x2d1   :  { %863 = vmatmul.mubr.f32.gmra.mxu0 %v668_v18 }
 0x2d2   :  { %868 = vmatprep.mubr.f32.mxu0 %v1330_v2 }
 0x2d5   :  { %869 = vmatmul.mubr.f32.gmra.mxu0 %v669_v51 }
 0x359   :  { %v780_v59 = vpop.f32.mrf.mxu0 }
 0x35a   :  { %v781_v60 = vadd.f32 %v780_v59, %v1771_v57 }
 0x35b   :  { %v782_v61 = vpop.f32.mrf.mxu0 }
 0x35c   :  { %v875_v62 = vmax.f32 %v781_v60, 0.0  ;;  %v783_v63 = vadd.f32 %v782_v61, %v1773_v58 }
 0x35d   :  { %v786_v0 = vpop.f32.mrf.mxu0 }
 0x35e   :  { %907 = vst [vmem:[#allocation7] sm:$0xff] %v875_v62  ;;  %v876_v1 = vmax.f32 %v783_v63, 0.0  ;;  %v787_v2 = vadd.f32 %v786_v0, %v1771_v57 }
 0x35f   :  { %v788_v3 = vpop.f32.mrf.mxu0 }
 0x360   :  { %908 = vst [vmem:[#allocation7 + $0x8] sm:$0xff] %v876_v1  ;;  %v877_v4 = vmax.f32 %v787_v2, 0.0  ;;  %v789_v5 = vadd.f32 %v788_v3, %v1773_v58 }
 0x361   :  { %v792_v6 = vpop.f32.mrf.mxu0 }
 0x362   :  { %909 = vst [vmem:[#allocation7 + $0x10] sm:$0xff] %v877_v4  ;;  %v878_v7 = vmax.f32 %v789_v5, 0.0  ;;  %v793_v8 = vadd.f32 %v792_v6, %v1771_v57 }
 0x363   :  { %v794_v9 = vpop.f32.mrf.mxu0 }
 0x364   :  { %910 = vst [vmem:[#allocation7 + $0x18] sm:$0xff] %v878_v7  ;;  %v879_v10 = vmax.f32 %v793_v8, 0.0  ;;  %v795_v11 = vadd.f32 %v794_v9, %v1773_v58 }
 0x365   :  { %v798_v12 = vpop.f32.mrf.mxu0 }
 0x366   :  { %911 = vst [vmem:[#allocation7 + $0x20] sm:$0xff] %v879_v10  ;;  %v880_v13 = vmax.f32 %v795_v11, 0.0  ;;  %v799_v14 = vadd.f32 %v798_v12, %v1771_v57 }
 0x367   :  { %v800_v15 = vpop.f32.mrf.mxu0 }
 0x368   :  { %912 = vst [vmem:[#allocation7 + $0x28] sm:$0xff] %v880_v13  ;;  %v881_v16 = vmax.f32 %v799_v14, 0.0  ;;  %v801_v17 = vadd.f32 %v800_v15, %v1773_v58 }
 0x369   :  { %v804_v19 = vpop.f32.mrf.mxu0 }
 0x36a   :  { %913 = vst [vmem:[#allocation7 + $0x30] sm:$0xff] %v881_v16  ;;  %v882_v20 = vmax.f32 %v801_v17, 0.0  ;;  %v805_v21 = vadd.f32 %v804_v19, %v1771_v57 }
 0x36b   :  { %v806_v22 = vpop.f32.mrf.mxu0 }
 0x36c   :  { %914 = vst [vmem:[#allocation7 + $0x38] sm:$0xff] %v882_v20  ;;  %v883_v23 = vmax.f32 %v805_v21, 0.0  ;;  %v807_v24 = vadd.f32 %v806_v22, %v1773_v58 }
 0x36d   :  { %v810_v25 = vpop.f32.mrf.mxu0 }
 0x36e   :  { %915 = vst [vmem:[#allocation7 + $0x40] sm:$0xff] %v883_v23  ;;  %v884_v26 = vmax.f32 %v807_v24, 0.0  ;;  %v811_v27 = vadd.f32 %v810_v25, %v1771_v57 }
 0x36f   :  { %v812_v28 = vpop.f32.mrf.mxu0 }
 0x370   :  { %916 = vst [vmem:[#allocation7 + $0x48] sm:$0xff] %v884_v26  ;;  %v885_v29 = vmax.f32 %v811_v27, 0.0  ;;  %v813_v30 = vadd.f32 %v812_v28, %v1773_v58 }
 0x371   :  { %v816_v31 = vpop.f32.mrf.mxu0 }
 0x372   :  { %917 = vst [vmem:[#allocation7 + $0x50] sm:$0xff] %v885_v29  ;;  %v886_v32 = vmax.f32 %v813_v30, 0.0  ;;  %v817_v33 = vadd.f32 %v816_v31, %v1771_v57 }
 0x373   :  { %v818_v34 = vpop.f32.mrf.mxu0 }
 0x374   :  { %918 = vst [vmem:[#allocation7 + $0x58] sm:$0xff] %v886_v32  ;;  %v887_v35 = vmax.f32 %v817_v33, 0.0  ;;  %v819_v36 = vadd.f32 %v818_v34, %v1773_v58 }
 0x375   :  { %v822_v37 = vpop.f32.mrf.mxu0 }
 0x376   :  { %919 = vst [vmem:[#allocation7 + $0x60] sm:$0xff] %v887_v35  ;;  %v888_v38 = vmax.f32 %v819_v36, 0.0  ;;  %v823_v39 = vadd.f32 %v822_v37, %v1771_v57 }
 0x377   :  { %v824_v40 = vpop.f32.mrf.mxu0 }
 0x378   :  { %920 = vst [vmem:[#allocation7 + $0x68] sm:$0xff] %v888_v38  ;;  %v889_v41 = vmax.f32 %v823_v39, 0.0  ;;  %v825_v42 = vadd.f32 %v824_v40, %v1773_v58 }
 0x379   :  { %v828_v43 = vpop.f32.mrf.mxu0 }
 0x37a   :  { %921 = vst [vmem:[#allocation7 + $0x70] sm:$0xff] %v889_v41  ;;  %v890_v44 = vmax.f32 %v825_v42, 0.0  ;;  %v829_v45 = vadd.f32 %v828_v43, %v1771_v57 }
 0x37b   :  { %v830_v46 = vpop.f32.mrf.mxu0 }
 0x37c   :  { %922 = vst [vmem:[#allocation7 + $0x78] sm:$0xff] %v890_v44  ;;  %v891_v47 = vmax.f32 %v829_v45, 0.0  ;;  %v831_v48 = vadd.f32 %v830_v46, %v1773_v58 }
 0x37d   :  { %v834_v49 = vpop.f32.mrf.mxu0 }
 0x37e   :  { %923 = vst [vmem:[#allocation7 + $0x80] sm:$0xff] %v891_v47  ;;  %v892_v50 = vmax.f32 %v831_v48, 0.0  ;;  %v835_v18 = vadd.f32 %v834_v49, %v1771_v57 }
 0x37f   :  { %v836_v51 = vpop.f32.mrf.mxu0 }
 0x380   :  { %924 = vst [vmem:[#allocation7 + $0x88] sm:$0xff] %v892_v50  ;;  %v893_v52 = vmax.f32 %v835_v18, 0.0  ;;  %v837_v53 = vadd.f32 %v836_v51, %v1773_v58 }
 0x381   :  { %v840_v54 = vpop.f32.mrf.mxu0 }
 0x382   :  { %925 = vst [vmem:[#allocation7 + $0x90] sm:$0xff] %v893_v52  ;;  %v894_v55 = vmax.f32 %v837_v53, 0.0  ;;  %v841_v56 = vadd.f32 %v840_v54, %v1771_v57 }
 0x383   :  { %v842_v59 = vpop.f32.mrf.mxu0 }
 0x384   :  { %926 = vst [vmem:[#allocation7 + $0x98] sm:$0xff] %v894_v55  ;;  %v895_v60 = vmax.f32 %v841_v56, 0.0  ;;  %v843_v61 = vadd.f32 %v842_v59, %v1773_v58 }
 0x385   :  { %v846_v62 = vpop.f32.mrf.mxu0 }
 0x386   :  { %927 = vst [vmem:[#allocation7 + $0xa0] sm:$0xff] %v895_v60  ;;  %v896_v63 = vmax.f32 %v843_v61, 0.0  ;;  %v847_v0 = vadd.f32 %v846_v62, %v1771_v57 }
 0x387   :  { %v848_v1 = vpop.f32.mrf.mxu0 }
 0x388   :  { %928 = vst [vmem:[#allocation7 + $0xa8] sm:$0xff] %v896_v63  ;;  %v897_v2 = vmax.f32 %v847_v0, 0.0  ;;  %v849_v3 = vadd.f32 %v848_v1, %v1773_v58 }
 0x389   :  { %v852_v4 = vpop.f32.mrf.mxu0 }
 0x38a   :  { %929 = vst [vmem:[#allocation7 + $0xb0] sm:$0xff] %v897_v2  ;;  %v898_v5 = vmax.f32 %v849_v3, 0.0  ;;  %v853_v6 = vadd.f32 %v852_v4, %v1771_v57 }
 0x38b   :  { %v854_v7 = vpop.f32.mrf.mxu0 }
 0x38c   :  { %930 = vst [vmem:[#allocation7 + $0xb8] sm:$0xff] %v898_v5  ;;  %v899_v8 = vmax.f32 %v853_v6, 0.0  ;;  %v855_v9 = vadd.f32 %v854_v7, %v1773_v58 }
 0x38d   :  { %v858_v10 = vpop.f32.mrf.mxu0 }
 0x38e   :  { %931 = vst [vmem:[#allocation7 + $0xc0] sm:$0xff] %v899_v8  ;;  %v900_v11 = vmax.f32 %v855_v9, 0.0  ;;  %v859_v12 = vadd.f32 %v858_v10, %v1771_v57 }
 0x38f   :  { %v860_v13 = vpop.f32.mrf.mxu0 }
 0x390   :  { %932 = vst [vmem:[#allocation7 + $0xc8] sm:$0xff] %v900_v11  ;;  %v901_v14 = vmax.f32 %v859_v12, 0.0  ;;  %v861_v15 = vadd.f32 %v860_v13, %v1773_v58 }
 0x391   :  { %v864_v16 = vpop.f32.mrf.mxu0 }
 0x392   :  { %933 = vst [vmem:[#allocation7 + $0xd0] sm:$0xff] %v901_v14  ;;  %v902_v17 = vmax.f32 %v861_v15, 0.0  ;;  %v865_v19 = vadd.f32 %v864_v16, %v1771_v57 }
 0x393   :  { %v866_v20 = vpop.f32.mrf.mxu0 }
 0x394   :  { %934 = vst [vmem:[#allocation7 + $0xd8] sm:$0xff] %v902_v17  ;;  %v903_v21 = vmax.f32 %v865_v19, 0.0  ;;  %v867_v22 = vadd.f32 %v866_v20, %v1773_v58 }
 0x395   :  { %v870_v23 = vpop.f32.mrf.mxu0 }
 0x396   :  { %935 = vst [vmem:[#allocation7 + $0xe0] sm:$0xff] %v903_v21  ;;  %v904_v24 = vmax.f32 %v867_v22, 0.0  ;;  %v871_v25 = vadd.f32 %v870_v23, %v1771_v57 }
 0x397   :  { %v872_v26 = vpop.f32.mrf.mxu0 }
 0x398   :  { %936 = vst [vmem:[#allocation7 + $0xe8] sm:$0xff] %v904_v24  ;;  %v905_v27 = vmax.f32 %v871_v25, 0.0  ;;  %v873_v28 = vadd.f32 %v872_v26, %v1773_v58 }
 0x39a   :  { %937 = vst [vmem:[#allocation7 + $0xf0] sm:$0xff] %v905_v27  ;;  %v906_v29 = vmax.f32 %v873_v28, 0.0 }
 0x39c   :  { %938 = vst [vmem:[#allocation7 + $0xf8] sm:$0xff] %v906_v29 }
 0x39d   :  { %1311 = shalt.err (!%p1308_p0)
}
 0x39e   :  { %s1332_s27 = smov 256   ;;  %s1333_s28 = smov 16  }
 0x39f   :  { %952 = dma.vmem_to_hbm [thread:$0]  %s947_s0, 4096, %s1817_s7, [#allocation4], %s1332_s27, %s1332_s27, %s1333_s28  }
 0x3a0   :  { %1324 = dma.done.wait [#allocation4], 4096  }
 0x3a1   :  { %1325 = vsyncadd [#allocation4], 4294963200 }
 0x3a2   :  { %958 = vsyncpa [#allocation3], 1 }
 0x3a3   :  { %959 = vsyncpa [#allocation6], 1 }
 0x3a4   :  { %960 = vsyncpa [#allocation4], 1 }

</bundles_post_ra>
